<compile_context>
chip_gen: v5e
topology: v5e:2x2
jax: 0.10.0
libtpu: 0.0.40
codegen_flags: <defaults>
</compile_context>

<pallas_src>
import functools

import jax
import jax.numpy as jnp
from jax import lax
from jax.experimental import pallas as pl
from jax.experimental.pallas import tpu as pltpu

EPS = 1e-5
EXPANSION = 4

# Row-tile size.  512 per review guidance (v5e/v6e: 512-1024, v7x: 256-512).
TM = 512
LANE = 128
VMEM_LIMIT = 32 * 1024 * 1024     # explicit, safe on all of v5e/v6e/v7x


def _rup(v, m):
    return (v + m - 1) // m * m


def _tn_for(n):
    # Output-channel tile: 256 drives the full 256-wide MXU on v6e/v7x when the
    # padded channel dim allows; otherwise 128.
    return 256 if n % 256 == 0 else 128


def _tm_for(m):
    return min(TM, _rup(m, 8))


# ----------------------------------------------------------------------------
# Kernel 1: (tm, K) @ (K, tn) matmul + fused BN-statistics epilogue
#           (optional fused input-BN+ReLU prologue for the previous layer).
# ----------------------------------------------------------------------------
def _mm_stats_kernel(*refs, fuse_in_bn, block_m, m_valid):
    if fuse_in_bn:
        x_ref, w_ref, a_ref, b_ref, y_ref, s_ref, q_ref = refs
        x = x_ref[...].astype(jnp.float32)
        x = jnp.maximum(x * a_ref[...] + b_ref[...], 0.0)      # prev-layer BN + ReLU
        if m_valid is not None:
            # Zero padded/garbage tail rows so they don't pollute this layer's
            # output or BN statistics.
            row = pl.program_id(0) * block_m + lax.broadcasted_iota(
                jnp.int32, (block_m, 1), 0)
            x = jnp.where(row < m_valid, x, 0.0)
        x = x.astype(jnp.bfloat16)
        # NOTE: for nn>1 this prologue is recomputed per output-channel tile;
        # accepted as VPU filler (kernel is MXU/HBM bound at these shapes).
    else:
        x_ref, w_ref, y_ref, s_ref, q_ref = refs
        x = x_ref[...]                                          # already bf16

    acc = jnp.dot(x, w_ref[...], preferred_element_type=jnp.float32)
    y_ref[...] = acc.astype(y_ref.dtype)
    # Per-channel partial statistics from the f32 accumulator (still in VMEM).
    tn = acc.shape[-1]
    s_ref[...] = jnp.sum(acc, axis=0).reshape(1, 1, tn)
    q_ref[...] = jnp.sum(acc * acc, axis=0).reshape(1, 1, tn)


def matmul_bn_stats(x, w, in_scale=None, in_shift=None, m_valid=None, tm=None):
    """x:(Mp,Kp) bf16, w:(Kp,Np) bf16 -> (y:(Mp,Np) bf16, sum:(Np,), sumsq:(Np,))."""
    Mp, Kp = x.shape
    Kp2, Np = w.shape
    if tm is None:
        tm = _tm_for(Mp)
    assert Kp == Kp2 and Mp % tm == 0 and Np % LANE == 0
    tn = _tn_for(Np)
    nm, nn = Mp // tm, Np // tn
    fuse = in_scale is not None
    mask_rows = m_valid if (fuse and m_valid is not None and m_valid < Mp) else None

    kernel = functools.partial(_mm_stats_kernel, fuse_in_bn=fuse,
                               block_m=tm, m_valid=mask_rows)
    # Grid order (i outer, j inner): the (large) activation row-tile is the
    # resident operand; W is re-streamed nm times (nm kept small via TM=512).
    in_specs = [pl.BlockSpec((tm, Kp), lambda i, j: (i, 0)),
                pl.BlockSpec((Kp, tn), lambda i, j: (0, j))]
    args = [x, w]
    if fuse:
        in_specs += [pl.BlockSpec((1, Kp), lambda i, j: (0, 0)),
                     pl.BlockSpec((1, Kp), lambda i, j: (0, 0))]
        args += [in_scale, in_shift]

    y, s, q = pl.pallas_call(
        kernel,
        out_shape=(jax.ShapeDtypeStruct((Mp, Np), jnp.bfloat16),
                   jax.ShapeDtypeStruct((nm, 1, Np), jnp.float32),
                   jax.ShapeDtypeStruct((nm, 1, Np), jnp.float32)),
        grid=(nm, nn),
        in_specs=in_specs,
        out_specs=(pl.BlockSpec((tm, tn), lambda i, j: (i, j)),
                   pl.BlockSpec((1, 1, tn), lambda i, j: (i, 0, j)),
                   pl.BlockSpec((1, 1, tn), lambda i, j: (i, 0, j))),
        compiler_params=pltpu.CompilerParams(
            dimension_semantics=("parallel", "parallel"),
            vmem_limit_bytes=VMEM_LIMIT),
    )(*args)
    # Tiny cross-tile reduction of the partial stats (f32, done by XLA).
    return y, s[:, 0, :].sum(axis=0), q[:, 0, :].sum(axis=0)


# ----------------------------------------------------------------------------
# Kernel 2: 3x3 conv with fused bn1-normalize+ReLU prologue, dh-grouped taps
#           (three K=3*Cp matmuls), zero post-ReLU halo built in a VMEM scratch,
#           and a fused BN-statistics epilogue.
#   Grid step = (one image, one output-channel tile).  The full (stride-1)
#   spatial resolution is always computed; for stride>1 the statistics are
#   restricted in-kernel to the stride-selected positions and the output is
#   subsampled by XLA afterwards.
# ----------------------------------------------------------------------------
def _conv3x3_fused_kernel(x_ref, a_ref, b_ref, w_ref, y_ref, s_ref, q_ref,
                          xv_ref, *, h, w, cp, stride):
    # Build the dh-grouped, spatially-padded, bn1-normalized+ReLU'd image once
    # per batch element (the j output-channel axis is "arbitrary" / sequential,
    # so j==0 always runs first for each b).
    @pl.when(pl.program_id(1) == 0)
    def _build_patches():
        xv_ref[...] = jnp.zeros(xv_ref.shape, xv_ref.dtype)       # zero halo
        norm = jnp.maximum(
            x_ref[0].astype(jnp.float32) * a_ref[...] + b_ref[...], 0.0
        ).astype(jnp.bfloat16)
        # xv[oh, wcol, dh*cp + c] = padded_norm[oh + dh, wcol, c]
        xv_ref[1:h, 1:w + 1, 0:cp] = norm[0:h - 1]
        xv_ref[0:h, 1:w + 1, cp:2 * cp] = norm
        xv_ref[0:h - 1, 1:w + 1, 2 * cp:3 * cp] = norm[1:h]

    tn = y_ref.shape[-1]
    acc = jnp.zeros((h * w, tn), jnp.float32)
    for dw in range(3):                               # 3 taps, each K = 3*cp
        tap = xv_ref[:, dw:dw + w, :].reshape(h * w, 3 * cp)
        acc = acc + jnp.dot(tap, w_ref[dw * 3 * cp:(dw + 1) * 3 * cp, :],
                            preferred_element_type=jnp.float32)
    y_ref[...] = acc.astype(y_ref.dtype)

    # BN statistics over the stride-selected output positions only.
    if stride == 1:
        sel = acc
    else:
        idx = lax.broadcasted_iota(jnp.int32, (h * w, 1), 0)
        keep = ((idx // w) % stride == 0) & ((idx % w) % stride == 0)
        sel = jnp.where(keep, acc, 0.0)
    s_ref[...] = jnp.sum(sel, axis=0).reshape(1, 1, tn)
    q_ref[...] = jnp.sum(sel * sel, axis=0).reshape(1, 1, tn)


def conv3x3_bn1_fused(y1, sc1, sh1, w2g, n, h, w, cp, stride, out_rows):
    """y1:(n*h*w, cp) raw conv1 output (bf16); w2g:(9*cp, Coutp) bf16, dw-major.

    Returns (y2:(out_rows, Coutp) bf16 full-resolution conv2 output,
             sum:(Coutp,), sumsq:(Coutp,)) with stats over stride-selected rows.
    """
    coutp = w2g.shape[1]
    tn = _tn_for(coutp)
    nn = coutp // tn
    assert (h * w) % 8 == 0 and out_rows >= n * h * w
    x4 = y1.reshape(n, h, w, cp)
    kernel = functools.partial(_conv3x3_fused_kernel, h=h, w=w, cp=cp,
                               stride=stride)
    y, s, q = pl.pallas_call(
        kernel,
        out_shape=(jax.ShapeDtypeStruct((out_rows, coutp), jnp.bfloat16),
                   jax.ShapeDtypeStruct((n, 1, coutp), jnp.float32),
                   jax.ShapeDtypeStruct((n, 1, coutp), jnp.float32)),
        grid=(n, nn),
        in_specs=[pl.BlockSpec((1, h, w, cp), lambda b, j: (b, 0, 0, 0)),
                  pl.BlockSpec((1, cp), lambda b, j: (0, 0)),
                  pl.BlockSpec((1, cp), lambda b, j: (0, 0)),
                  pl.BlockSpec((9 * cp, tn), lambda b, j: (0, j))],
        out_specs=(pl.BlockSpec((h * w, tn), lambda b, j: (b, j)),
                   pl.BlockSpec((1, 1, tn), lambda b, j: (b, 0, j)),
                   pl.BlockSpec((1, 1, tn), lambda b, j: (b, 0, j))),
        scratch_shapes=[pltpu.VMEM((h, w + 2, 3 * cp), jnp.bfloat16)],
        compiler_params=pltpu.CompilerParams(
            dimension_semantics=("parallel", "arbitrary"),
            vmem_limit_bytes=VMEM_LIMIT),
    )(x4, sc1, sh1, w2g)
    return y, s[:, 0, :].sum(axis=0), q[:, 0, :].sum(axis=0)


# ----------------------------------------------------------------------------
# Kernel 3: tiled bn3 + shortcut-BN + add + ReLU (fully fused final epilogue),
#           bf16 output.
# ----------------------------------------------------------------------------
def _bn_add_relu_kernel(y_ref, r_ref, ay_ref, by_ref, ar_ref, br_ref, o_ref):
    y = y_ref[...].astype(jnp.float32) * ay_ref[...] + by_ref[...]
    r = r_ref[...].astype(jnp.float32) * ar_ref[...] + br_ref[...]
    o_ref[...] = jnp.maximum(y + r, 0.0).astype(o_ref.dtype)


def bn_add_relu(y, res, a_y, b_y, a_r, b_r, tm):
    Mp, Np = y.shape
    assert Mp % tm == 0
    tn = _tn_for(Np)
    return pl.pallas_call(
        _bn_add_relu_kernel,
        out_shape=jax.ShapeDtypeStruct((Mp, Np), jnp.bfloat16),
        grid=(Mp // tm, Np // tn),
        in_specs=[pl.BlockSpec((tm, tn), lambda i, j: (i, j)),
                  pl.BlockSpec((tm, tn), lambda i, j: (i, j)),
                  pl.BlockSpec((1, tn), lambda i, j: (0, j)),
                  pl.BlockSpec((1, tn), lambda i, j: (0, j)),
                  pl.BlockSpec((1, tn), lambda i, j: (0, j)),
                  pl.BlockSpec((1, tn), lambda i, j: (0, j))],
        out_specs=pl.BlockSpec((tm, tn), lambda i, j: (i, j)),
        compiler_params=pltpu.CompilerParams(
            dimension_semantics=("parallel", "parallel"),
            vmem_limit_bytes=VMEM_LIMIT),
    )(y, res, a_y, b_y, a_r, b_r)


# ----------------------------------------------------------------------------
# Glue (parameter layout, stats -> affine, padding) in plain JAX.
# ----------------------------------------------------------------------------
def _bn_affine(s, q, count, gamma, beta, cpad):
    """Per-channel scale/shift from accumulated sum / sum-of-squares (f32)."""
    mean = s / count
    var = jnp.maximum(q / count - mean * mean, 0.0)      # biased variance
    g = jnp.pad(gamma.astype(jnp.float32), (0, cpad - gamma.shape[0]))
    b = jnp.pad(beta.astype(jnp.float32), (0, cpad - beta.shape[0]))
    scale = g * lax.rsqrt(var + EPS)
    shift = b - mean * scale
    return scale.reshape(1, cpad), shift.reshape(1, cpad)


def _prep_w1x1(w_oihw, kin_p, kout_p):
    cout, cin = w_oihw.shape[0], w_oihw.shape[1]
    w = w_oihw.reshape(cout, cin).T                      # (cin, cout)
    w = jnp.pad(w, ((0, kin_p - cin), (0, kout_p - cout)))
    return w.astype(jnp.bfloat16)


def _prep_w3x3_grouped(w_oihw, cin_p, cout_p):
    """(cout, cin, 3, 3) -> (9*cin_p, cout_p), ordered (kw, kh, cin) row-major,
    matching the dh-grouped tap layout used by _conv3x3_fused_kernel."""
    cout, cin = w_oihw.shape[0], w_oihw.shape[1]
    w = jnp.transpose(w_oihw, (3, 2, 1, 0))              # (kw, kh, cin, cout)
    w = jnp.pad(w, ((0, 0), (0, 0), (0, cin_p - cin), (0, cout_p - cout)))
    return w.reshape(9 * cin_p, cout_p).astype(jnp.bfloat16)


def init_bottleneck_params(key, inplanes, outplanes, stride):
    cexp = outplanes * EXPANSION
    keys = jax.random.split(key, 12)

    def conv_w(k, cout, cin, kh, kw):
        fan_in = cin * kh * kw
        return (jax.random.normal(k, (cout, cin, kh, kw), jnp.float32)
                / jnp.sqrt(jnp.float32(fan_in)))

    p = {
        "w1": conv_w(keys[0], outplanes, inplanes, 1, 1),
        "g1": 1.0 + 0.1 * jax.random.normal(keys[1], (outplanes,), jnp.float32),
        "b1": 0.1 * jax.random.normal(keys[2], (outplanes,), jnp.float32),
        "w2": conv_w(keys[3], outplanes, outplanes, 3, 3),
        "g2": 1.0 + 0.1 * jax.random.normal(keys[4], (outplanes,), jnp.float32),
        "b2": 0.1 * jax.random.normal(keys[5], (outplanes,), jnp.float32),
        "w3": conv_w(keys[6], cexp, outplanes, 1, 1),
        "g3": 1.0 + 0.1 * jax.random.normal(keys[7], (cexp,), jnp.float32),
        "b3": 0.1 * jax.random.normal(keys[8], (cexp,), jnp.float32),
    }
    if stride != 1 or inplanes != cexp:
        p["ws"] = conv_w(keys[9], cexp, inplanes, 1, 1)
        p["gs"] = 1.0 + 0.1 * jax.random.normal(keys[10], (cexp,), jnp.float32)
        p["bs"] = 0.1 * jax.random.normal(keys[11], (cexp,), jnp.float32)
    return p


def bottleneck_forward(x_nchw, params, stride):
    """Pallas implementation of BottleNeck.forward (NCHW in / NCHW out, bf16)."""
    # Cast NCHW->NHWC directly to bf16 (no f32 NHWC intermediate).
    x = jnp.transpose(x_nchw, (0, 2, 3, 1)).astype(jnp.bfloat16)
    N, H, W, Cin = x.shape
    C = params["w1"].shape[0]            # outplanes
    Cexp = params["w3"].shape[0]         # outplanes * 4
    Cin_p, C_p, Cexp_p = _rup(Cin, LANE), _rup(C, LANE), _rup(Cexp, LANE)

    assert H % stride == 0 and W % stride == 0 and (H * W) % 8 == 0
    Ho = (H + 2 - 3) // stride + 1
    Wo = (W + 2 - 3) // stride + 1
    M1, M2 = N * H * W, N * Ho * Wo
    tm1, tm2 = _tm_for(M1), _tm_for(M2)
    M1p, M2p = _rup(M1, tm1), _rup(M2, tm2)

    # Operands: channel-padded (lane-dense), bf16.
    xf = jnp.pad(x.reshape(M1, Cin), ((0, M1p - M1), (0, Cin_p - Cin)))
    w1 = _prep_w1x1(params["w1"], Cin_p, C_p)
    w2 = _prep_w3x3_grouped(params["w2"], C_p, C_p)
    w3 = _prep_w1x1(params["w3"], C_p, Cexp_p)

    # conv1 (1x1) with fused bn1 statistics.
    y1, s1, q1 = matmul_bn_stats(xf, w1, tm=tm1)
    sc1, sh1 = _bn_affine(s1, q1, M1, params["g1"], params["b1"], C_p)

    # conv2 (3x3, pad=1) with fused bn1-normalize+ReLU prologue and bn2 stats.
    # Output emitted already row-aligned for conv3 (stride=1), so no XLA pad pass.
    y1v = y1 if M1p == M1 else y1[:M1]
    out_rows = _rup(M1, tm2) if stride == 1 else _rup(M1, 8)
    y2, s2, q2 = conv3x3_bn1_fused(y1v, sc1, sh1, w2, N, H, W, C_p, stride,
                                   out_rows)
    sc2, sh2 = _bn_affine(s2, q2, M2, params["g2"], params["b2"], C_p)

    if stride == 1:
        y2f = y2                         # (M2p, C_p); garbage tail rows (if any)
        m2_valid = M2                    # are masked in conv3's fused prologue.
    else:
        # TODO(synk): stride>1 computes the full-resolution conv2 and subsamples
        # in XLA; a strided in-kernel tap path would avoid this extra pass.
        y2s = y2[:M1].reshape(N, Ho, stride, Wo, stride, C_p)[:, :, 0, :, 0, :]
        y2f = jnp.pad(y2s.reshape(M2, C_p), ((0, M2p - M2), (0, 0)))
        m2_valid = M2

    # conv3 (1x1) with fused bn2-normalize+ReLU prologue and bn3 statistics.
    y3, s3, q3 = matmul_bn_stats(y2f, w3, in_scale=sc2, in_shift=sh2,
                                 m_valid=m2_valid, tm=tm2)
    sc3, sh3 = _bn_affine(s3, q3, M2, params["g3"], params["b3"], Cexp_p)

    # Shortcut branch.
    if stride != 1 or Cin != Cexp:
        ws = _prep_w1x1(params["ws"], Cin_p, Cexp_p)
        xs = x[:, ::stride, ::stride, :].reshape(M2, Cin)
        xs = jnp.pad(xs, ((0, M2p - M2), (0, Cin_p - Cin)))
        ys, ss, qs = matmul_bn_stats(xs, ws, tm=tm2)
        scs, shs = _bn_affine(ss, qs, M2, params["gs"], params["bs"], Cexp_p)
    else:
        # Identity shortcut: relies on zero channel padding of x and on the final
        # slice to :Cexp (documented invariant).
        ys = xf
        scs = jnp.ones((1, Cexp_p), jnp.float32)
        shs = jnp.zeros((1, Cexp_p), jnp.float32)

    # Fused bn3 + shortcut-BN + add + relu (bf16 store).
    out = bn_add_relu(y3, ys, sc3, sh3, scs, shs, tm=tm2)
    out = out[:M2, :Cexp].reshape(N, Ho, Wo, Cexp)
    return jnp.transpose(out, (0, 3, 1, 2))              # back to NCHW (bf16)


# ----------------------------------------------------------------------------
# Pure-JAX f32 reference (ground-truth semantics for the Pallas path).
# ----------------------------------------------------------------------------
def _ref_conv(x_nhwc, w_oihw, stride, padding):
    w = jnp.transpose(w_oihw, (2, 3, 1, 0))  # HWIO
    return lax.conv_general_dilated(
        x_nhwc, w, (stride, stride), padding,
        dimension_numbers=("NHWC", "HWIO", "NHWC"))


def _ref_bn(x_nhwc, g, b):
    mean = x_nhwc.mean(axis=(0, 1, 2), keepdims=True)
    var = jnp.square(x_nhwc - mean).mean(axis=(0, 1, 2), keepdims=True)
    return (x_nhwc - mean) * lax.rsqrt(var + EPS) * g + b


def bottleneck_reference(x_nchw, params, stride):
    x = jnp.transpose(x_nchw, (0, 2, 3, 1)).astype(jnp.float32)
    Cin = x.shape[-1]
    Cexp = params["w3"].shape[0]
    if stride != 1 or Cin != Cexp:
        s = _ref_bn(_ref_conv(x, params["ws"], stride, [(0, 0), (0, 0)]),
                    params["gs"], params["bs"])
    else:
        s = x
    y = jnp.maximum(_ref_bn(_ref_conv(x, params["w1"], 1, [(0, 0), (0, 0)]),
                            params["g1"], params["b1"]), 0.0)
    y = jnp.maximum(_ref_bn(_ref_conv(y, params["w2"], stride, [(1, 1), (1, 1)]),
                            params["g2"], params["b2"]), 0.0)
    y = _ref_bn(_ref_conv(y, params["w3"], 1, [(0, 0), (0, 0)]),
                params["g3"], params["b3"])
    out = jnp.maximum(s + y, 0.0)
    return jnp.transpose(out, (0, 3, 1, 2))


# ----------------------------------------------------------------------------
if __name__ == "__main__":
    batch, spatial = 2, 16
    # (inplanes, outplanes, stride):
    #   - conv-shortcut variant, - identity-shortcut variant, - downsampling
    #     (stride=2) variant (previously unvalidated).
    configs = [(4, 4, 1), (16, 4, 1), (4, 4, 2)]

    key = jax.random.PRNGKey(0)
    for inplanes, outplanes, stride in configs:
        key, kx, kp = jax.random.split(key, 3)
        x = jax.random.normal(kx, (batch, inplanes, spatial, spatial), jnp.float32)
        params = init_bottleneck_params(kp, inplanes, outplanes, stride)

        out = jax.block_until_ready(bottleneck_forward(x, params, stride))
        expected = (batch, outplanes * EXPANSION, spatial // stride,
                    spatial // stride)
        assert out.shape == expected, (out.shape, expected)

        ref = jax.block_until_ready(bottleneck_reference(x, params, stride))
        outf = out.astype(jnp.float32)
        # bf16 MXU operands / bf16 inter-kernel activations / bf16 final store
        # -> relaxed tolerance vs. the pure-f32 reference.
        max_err = float(jnp.max(jnp.abs(outf - ref)))
        assert jnp.allclose(outf, ref, rtol=5e-2, atol=5e-2), max_err

    print("KERNEL_OK")
</pallas_src>

<mosaic_0001>
module attributes {stable_mosaic.version = 11 : i64} {
  func.func @_mm_stats_kernel(%arg0: i32, %arg1: i32, %arg2: memref<512x128xbf16, #tpu.memory_space<vmem>>, %arg3: memref<128x128xbf16, #tpu.memory_space<vmem>>, %arg4: memref<512x128xbf16, #tpu.memory_space<vmem>>, %arg5: memref<1x1x128xf32, #tpu.memory_space<vmem>>, %arg6: memref<1x1x128xf32, #tpu.memory_space<vmem>>) attributes {dimension_semantics = [#tpu.dimension_semantics<parallel>, #tpu.dimension_semantics<parallel>], iteration_bounds = array<i64: 1, 1>, scalar_prefetch = 0 : i64, scratch_operands = 0 : i64, tpu.core_type = #tpu.core_type<tc>, window_params = [{transform_indices = @transform_0, window_bounds = array<i64: 512, 128>}, {transform_indices = @transform_1, window_bounds = array<i64: 128, 128>}, {transform_indices = @transform_2, window_bounds = array<i64: 512, 128>}, {transform_indices = @transform_3, window_bounds = array<i64: 1, 1, 128>}, {transform_indices = @transform_4, window_bounds = array<i64: 1, 1, 128>}]} {
    %c0 = arith.constant 0 : index
    %c0_0 = arith.constant 0 : index
    %0 = vector.load %arg2[%c0, %c0_0] : memref<512x128xbf16, #tpu.memory_space<vmem>>, vector<512x128xbf16>
    %c0_1 = arith.constant 0 : index
    %c0_2 = arith.constant 0 : index
    %1 = vector.load %arg3[%c0_1, %c0_2] : memref<128x128xbf16, #tpu.memory_space<vmem>>, vector<128x128xbf16>
    %cst = arith.constant dense<0.000000e+00> : vector<512x128xf32>
    %2 = tpu.matmul %0, %1, %cst {dimension_numbers = #tpu.dot_dimension_numbers<[1], [0], [0], [1], [0, 0, 1, 1], [], []>} : vector<512x128xbf16>, vector<128x128xbf16>, vector<512x128xf32> -> vector<512x128xf32>
    %3 = arith.truncf %2 : vector<512x128xf32> to vector<512x128xbf16>
    %c0_3 = arith.constant 0 : index
    %c0_4 = arith.constant 0 : index
    %4 = vector.load %arg4[%c0_3, %c0_4] : memref<512x128xbf16, #tpu.memory_space<vmem>>, vector<512x128xbf16>
    tpu.vector_store %arg4[%c0_3, %c0_4], %3 {strides = array<i32>} : memref<512x128xbf16, #tpu.memory_space<vmem>>, vector<512x128xbf16>,
    %cst_5 = arith.constant dense<0.000000e+00> : vector<128xf32>
    %5 = vector.multi_reduction <add>, %2, %cst_5 [0] : vector<512x128xf32> to vector<128xf32>
    %6 = vector.shape_cast %5 : vector<128xf32> to vector<1x1x128xf32>
    %c0_6 = arith.constant 0 : index
    %c0_7 = arith.constant 0 : index
    %c0_8 = arith.constant 0 : index
    %7 = vector.load %arg5[%c0_6, %c0_7, %c0_8] : memref<1x1x128xf32, #tpu.memory_space<vmem>>, vector<1x1x128xf32>
    tpu.vector_store %arg5[%c0_6, %c0_7, %c0_8], %6 {strides = array<i32>} : memref<1x1x128xf32, #tpu.memory_space<vmem>>, vector<1x1x128xf32>,
    %8 = arith.mulf %2, %2 : vector<512x128xf32>
    %cst_9 = arith.constant dense<0.000000e+00> : vector<128xf32>
    %9 = vector.multi_reduction <add>, %8, %cst_9 [0] : vector<512x128xf32> to vector<128xf32>
    %10 = vector.shape_cast %9 : vector<128xf32> to vector<1x1x128xf32>
    %c0_10 = arith.constant 0 : index
    %c0_11 = arith.constant 0 : index
    %c0_12 = arith.constant 0 : index
    %11 = vector.load %arg6[%c0_10, %c0_11, %c0_12] : memref<1x1x128xf32, #tpu.memory_space<vmem>>, vector<1x1x128xf32>
    tpu.vector_store %arg6[%c0_10, %c0_11, %c0_12], %10 {strides = array<i32>} : memref<1x1x128xf32, #tpu.memory_space<vmem>>, vector<1x1x128xf32>,
    return
  }
  func.func @transform_0(%arg0: i32, %arg1: i32) -> (i32, i32) {
    %c0_i32 = arith.constant 0 : i32
    %c0_i32_0 = arith.constant 0 : i32
    return %arg0, %c0_i32 : i32, i32
  }
  func.func @transform_1(%arg0: i32, %arg1: i32) -> (i32, i32) {
    %c0_i32 = arith.constant 0 : i32
    %c0_i32_0 = arith.constant 0 : i32
    return %c0_i32, %arg1 : i32, i32
  }
  func.func @transform_2(%arg0: i32, %arg1: i32) -> (i32, i32) {
    %c0_i32 = arith.constant 0 : i32
    return %arg0, %arg1 : i32, i32
  }
  func.func @transform_3(%arg0: i32, %arg1: i32) -> (i32, i32, i32) {
    %c0_i32 = arith.constant 0 : i32
    %c0_i32_0 = arith.constant 0 : i32
    return %arg0, %c0_i32, %arg1 : i32, i32, i32
  }
  func.func @transform_4(%arg0: i32, %arg1: i32) -> (i32, i32, i32) {
    %c0_i32 = arith.constant 0 : i32
    %c0_i32_0 = arith.constant 0 : i32
    return %arg0, %c0_i32, %arg1 : i32, i32, i32
  }
}

</mosaic_0001>

<bundles_post_ra>
// kernel: tpu_custom_call.1
= control target key start
LH: loop header
LB: loop body
LE: loop exit
PB: predicated region body
PF: predicated region fallthrough
CT: control target
= control target key end

     0   :  { %10 = vsyncpa [#allocation3], 0  ;;  %s1820_s0 = inlined_call_operand.hbm [shape: bf16[512,128], index: 0, kind: input, shape index: {}]   ;;  %s1821_s1 = inlined_call_operand.hbm [shape: bf16[128,128], index: 1, kind: input, shape index: {}]   ;;  %s1822_s2 = inlined_call_operand.hbm [shape: bf16[512,128], index: 2, kind: output, shape index: {0}]   ;;  %s1823_s3 = inlined_call_operand.hbm [shape: f32[1,1,128], index: 3, kind: output, shape index: {1}]   ;;  %s1824_s4 = inlined_call_operand.hbm [shape: f32[1,1,128], index: 4, kind: output, shape index: {2}]  }
   0x1   :  { %11 = vsyncpa [#allocation6], 0 }
   0x2   :  { %12 = vsyncpa [#allocation4], 0 }
   0x3   :  { %13 = vsyncpa [#allocation9], 0  ;;  %s18_s17 = sshll.u32 %s1820_s0, 4  ;;  %s1470_s18 = smov [#allocation2]   ;;  %s19_s17 = int_to_ptr.hbm [resolvable:$true] %s18_s17 }
   0x4   :  { %s20_s19 = sshll.u32 %s1470_s18, 4  ;;  %s31_s22 = sshll.u32 %s1821_s1, 4  ;;  %s21_s19 = int_to_ptr.vmem [resolvable:$true] %s20_s19  ;;  %s32_s22 = int_to_ptr.hbm [resolvable:$true] %s31_s22 }
   0x5   :  { %s1471_s23 = smov 64   ;;  %s1472_s24 = smov 4  }
   0x6   :  { %26 = dma.hbm_to_vmem [thread:$0]  %s19_s17, 4096, %s21_s19, [#allocation3], %s1471_s23, %s1471_s23, %s1472_s24  }
   0x7   :  { %s1473_s25 = smov [#allocation5]  }
   0x8   :  { %s33_s26 = sshll.u32 %s1473_s25, 4  ;;  %s34_s26 = int_to_ptr.vmem [resolvable:$true] %s33_s26 }
   0x9   :  { %39 = dma.hbm_to_vmem [thread:$0]  %s32_s22, 1024, %s34_s26, [#allocation6], %s1471_s23, %s1471_s23, %s1472_s24  }
   0xa   :  { %1462 = dma.done.wait [#allocation3], 4096  }
   0xb   :  { %1463 = vsyncadd [#allocation3], 4294963200 }
   0xc   :  { %1464 = dma.done.wait [#allocation6], 1024  }
   0xd   :  { %1465 = vsyncadd [#allocation6], 4294966272  ;;  %v1119_v0 = vld [vmem:[#allocation5 + $0x38] sm:$0xff]  ;;  %v1118_v1 = vld [vmem:[#allocation5 + $0x30] sm:$0xff]  ;;  %s1474_s0 = smov [#allocation7]   ;;  %s875_s29 = sshll.u32 %s1822_s2, 4  ;;  %s876_s29 = int_to_ptr.hbm [resolvable:$true] %s875_s29 }
   0xe   :  { %368 = vmatpush.bf16.msra.mxu0 %v1119_v0  ;;  %1311 = vmatpush.bf16.msra.mxu1 %v1119_v0  ;;  %v1117_v2 = vld [vmem:[#allocation5 + $0x28] sm:$0xff]  ;;  %v1116_v3 = vld [vmem:[#allocation5 + $0x20] sm:$0xff]  ;;  %v1115_v4 = vld [vmem:[#allocation5 + $0x18] sm:$0xff]  ;;  %s873_s1 = sshll.u32 %s1474_s0, 4  ;;  %s1475_s2 = smov [#allocation8]   ;;  %s874_s1 = int_to_ptr.vmem [resolvable:$true] %s873_s1 }
   0xf   :  { %1312 = vmatpush.bf16.msra.mxu2 %v1119_v0  ;;  %1313 = vmatpush.bf16.msra.mxu3 %v1119_v0  ;;  %v1114_v5 = vld [vmem:[#allocation5 + $0x10] sm:$0xff]  ;;  %v1113_v6 = vld [vmem:[#allocation5 + $0x8] sm:$0xff]  ;;  %v1112_v7 = vld [vmem:[#allocation5] sm:$0xff]  ;;  %s887_s30 = sshll.u32 %s1475_s2, 4  ;;  %s889_s7 = sshll.u32 %s1823_s3, 4  ;;  %s888_s30 = int_to_ptr.vmem [resolvable:$true] %s887_s30  ;;  %s890_s7 = int_to_ptr.hbm [resolvable:$true] %s889_s7 }
  0x10   :  { %v1080_v8 = vld [vmem:[#allocation2] sm:$0xff]  ;;  %v1081_v10 = vld [vmem:[#allocation2 + $0x8] sm:$0xff]  ;;  %v1082_v13 = vld [vmem:[#allocation2 + $0x10] sm:$0xff]  ;;  %s1476_s8 = smov [#allocation10]   ;;  %s900_s12 = sshll.u32 %s1824_s4, 4  ;;  %s901_s12 = int_to_ptr.hbm [resolvable:$true] %s900_s12 }
  0x11   :  { %v1088_v9 = vld [vmem:[#allocation2 + $0x40] sm:$0xff]  ;;  %v1089_v11 = vld [vmem:[#allocation2 + $0x48] sm:$0xff]  ;;  %v1090_v14 = vld [vmem:[#allocation2 + $0x50] sm:$0xff]  ;;  %s898_s9 = sshll.u32 %s1476_s8, 4  ;;  %s899_s9 = int_to_ptr.vmem [resolvable:$true] %s898_s9 }
  0x12   :  { %369 = vmatpush.bf16.msra.mxu0 %v1118_v1  ;;  %1314 = vmatpush.bf16.msra.mxu1 %v1118_v1  ;;  %v1096_v12 = vld [vmem:[#allocation2 + $0x80] sm:$0xff]  ;;  %v1097_v15 = vld [vmem:[#allocation2 + $0x88] sm:$0xff]  ;;  %v1083_v16 = vld [vmem:[#allocation2 + $0x18] sm:$0xff] }
  0x13   :  { %1315 = vmatpush.bf16.msra.mxu2 %v1118_v1  ;;  %1316 = vmatpush.bf16.msra.mxu3 %v1118_v1  ;;  %v1091_v17 = vld [vmem:[#allocation2 + $0x58] sm:$0xff]  ;;  %v1098_v18 = vld [vmem:[#allocation2 + $0x90] sm:$0xff]  ;;  %v1104_v19 = vld [vmem:[#allocation2 + $0xc0] sm:$0xff] }
  0x14   :  { %v1084_v20 = vld [vmem:[#allocation2 + $0x20] sm:$0xff]  ;;  %v1099_v22 = vld [vmem:[#allocation2 + $0x98] sm:$0xff]  ;;  %v1105_v23 = vld [vmem:[#allocation2 + $0xc8] sm:$0xff] }
  0x15   :  { %v1092_v21 = vld [vmem:[#allocation2 + $0x60] sm:$0xff]  ;;  %v1085_v24 = vld [vmem:[#allocation2 + $0x28] sm:$0xff]  ;;  %v1106_v27 = vld [vmem:[#allocation2 + $0xd0] sm:$0xff] }
  0x16   :  { %370 = vmatpush.bf16.msra.mxu0 %v1117_v2  ;;  %1317 = vmatpush.bf16.msra.mxu1 %v1117_v2  ;;  %v1093_v25 = vld [vmem:[#allocation2 + $0x68] sm:$0xff]  ;;  %v1100_v26 = vld [vmem:[#allocation2 + $0xa0] sm:$0xff]  ;;  %v1086_v28 = vld [vmem:[#allocation2 + $0x30] sm:$0xff] }
  0x17   :  { %1318 = vmatpush.bf16.msra.mxu2 %v1117_v2  ;;  %1319 = vmatpush.bf16.msra.mxu3 %v1117_v2  ;;  %v1094_v29 = vld [vmem:[#allocation2 + $0x70] sm:$0xff]  ;;  %v1101_v30 = vld [vmem:[#allocation2 + $0xa8] sm:$0xff]  ;;  %v1107_v31 = vld [vmem:[#allocation2 + $0xd8] sm:$0xff] }
  0x18   :  { %v1087_v32 = vld [vmem:[#allocation2 + $0x38] sm:$0xff]  ;;  %v1102_v34 = vld [vmem:[#allocation2 + $0xb0] sm:$0xff]  ;;  %v1108_v35 = vld [vmem:[#allocation2 + $0xe0] sm:$0xff] }
  0x19   :  { %v1095_v33 = vld [vmem:[#allocation2 + $0x78] sm:$0xff]  ;;  %v1109_v39 = vld [vmem:[#allocation2 + $0xe8] sm:$0xff]  ;;  %v1110_v53 = vld [vmem:[#allocation2 + $0xf0] sm:$0xff] }
  0x1a   :  { %371 = vmatpush.bf16.msra.mxu0 %v1116_v3  ;;  %1320 = vmatpush.bf16.msra.mxu1 %v1116_v3  ;;  %v1103_v38 = vld [vmem:[#allocation2 + $0xb8] sm:$0xff] }
  0x1b   :  { %1321 = vmatpush.bf16.msra.mxu2 %v1116_v3  ;;  %1322 = vmatpush.bf16.msra.mxu3 %v1116_v3 }
  0x1e   :  { %372 = vmatpush.bf16.msra.mxu0 %v1115_v4  ;;  %1323 = vmatpush.bf16.msra.mxu1 %v1115_v4 }
  0x1f   :  { %1324 = vmatpush.bf16.msra.mxu2 %v1115_v4  ;;  %1325 = vmatpush.bf16.msra.mxu3 %v1115_v4 }
  0x22   :  { %373 = vmatpush.bf16.msra.mxu0 %v1114_v5  ;;  %1326 = vmatpush.bf16.msra.mxu1 %v1114_v5 }
  0x23   :  { %1327 = vmatpush.bf16.msra.mxu2 %v1114_v5  ;;  %1328 = vmatpush.bf16.msra.mxu3 %v1114_v5  ;;  %v1111_v5 = vld [vmem:[#allocation2 + $0xf8] sm:$0xff] }
  0x26   :  { %374 = vmatpush.bf16.msra.mxu0 %v1113_v6  ;;  %1329 = vmatpush.bf16.msra.mxu1 %v1113_v6 }
  0x27   :  { %1330 = vmatpush.bf16.msra.mxu2 %v1113_v6  ;;  %1331 = vmatpush.bf16.msra.mxu3 %v1113_v6 }
  0x2a   :  { %375 = vmatpush.bf16.msra.mxu0 %v1112_v7  ;;  %1332 = vmatpush.bf16.msra.mxu1 %v1112_v7 }
  0x2b   :  { %1333 = vmatpush.bf16.msra.mxu2 %v1112_v7  ;;  %1334 = vmatpush.bf16.msra.mxu3 %v1112_v7 }
  0x2d   :  { %376 = vmatmul.bf16.vlgmr.msra.gmra.mxu0 %v1080_v8  ;;  %416 = vmatmul.bf16.vlgmr.msra.gmra.mxu1 %v1088_v9 }
  0x2e   :  { %456 = vmatmul.bf16.vlgmr.msra.gmra.mxu2 %v1096_v12  ;;  %496 = vmatmul.bf16.vlgmr.msra.gmra.mxu3 %v1104_v19 }
  0x3d   :  { %381 = vmatmul.bf16.gmra.mxu0 %v1081_v10  ;;  %421 = vmatmul.bf16.gmra.mxu1 %v1089_v11 }
  0x3e   :  { %461 = vmatmul.bf16.gmra.mxu2 %v1097_v15  ;;  %501 = vmatmul.bf16.gmra.mxu3 %v1105_v23 }
  0x4d   :  { %386 = vmatmul.bf16.gmra.mxu0 %v1082_v13  ;;  %426 = vmatmul.bf16.gmra.mxu1 %v1090_v14 }
  0x4e   :  { %466 = vmatmul.bf16.gmra.mxu2 %v1098_v18  ;;  %506 = vmatmul.bf16.gmra.mxu3 %v1106_v27 }
  0x5d   :  { %391 = vmatmul.bf16.gmra.mxu0 %v1083_v16  ;;  %431 = vmatmul.bf16.gmra.mxu1 %v1091_v17 }
  0x5e   :  { %471 = vmatmul.bf16.gmra.mxu2 %v1099_v22  ;;  %511 = vmatmul.bf16.gmra.mxu3 %v1107_v31 }
  0x6d   :  { %396 = vmatmul.bf16.gmra.mxu0 %v1084_v20  ;;  %436 = vmatmul.bf16.gmra.mxu1 %v1092_v21 }
  0x6e   :  { %476 = vmatmul.bf16.gmra.mxu2 %v1100_v26  ;;  %516 = vmatmul.bf16.gmra.mxu3 %v1108_v35 }
  0x7d   :  { %401 = vmatmul.bf16.gmra.mxu0 %v1085_v24  ;;  %441 = vmatmul.bf16.gmra.mxu1 %v1093_v25 }
  0x7e   :  { %481 = vmatmul.bf16.gmra.mxu2 %v1101_v30  ;;  %521 = vmatmul.bf16.gmra.mxu3 %v1109_v39 }
  0x8d   :  { %406 = vmatmul.bf16.gmra.mxu0 %v1086_v28  ;;  %446 = vmatmul.bf16.gmra.mxu1 %v1094_v29 }
  0x8e   :  { %486 = vmatmul.bf16.gmra.mxu2 %v1102_v34  ;;  %526 = vmatmul.bf16.gmra.mxu3 %v1110_v53 }
  0x9d   :  { %411 = vmatmul.bf16.gmra.mxu0 %v1087_v32  ;;  %451 = vmatmul.bf16.gmra.mxu1 %v1095_v33 }
  0x9e   :  { %491 = vmatmul.bf16.gmra.mxu2 %v1103_v38  ;;  %531 = vmatmul.bf16.gmra.mxu3 %v1111_v5 }
  0xaa   :  { %v377_v36 = vpop.f32.mrf.mxu0  ;;  %v1514_v37 = vpop.f32.mrf.mxu1 }
  0xab   :  { %v735_v40 = vmul.f32 %v377_v36, %v377_v36 }
  0xb1   :  { %v1526_v60 = vpop.f32.mrf.mxu2  ;;  %v1556_v20 = vpop.f32.mrf.mxu3 }
  0xb2   :  { %v379_v41 = vpop.f32.mrf.mxu0  ;;  %v1516_v42 = vpop.f32.mrf.mxu1 }
  0xb3   :  { %v1123_v43 = vpack.c.bf16 %v379_v41, %v377_v36  ;;  %v665_v44 = vadd.f32 %v379_v41, %v377_v36  ;;  %v736_v45 = vmul.f32 %v379_v41, %v379_v41  ;;  %v1163_v46 = vpack.c.bf16 %v1516_v42, %v1514_v37 }
  0xb5   :  { %1124 = vst [vmem:[#allocation7] sm:$0xff] %v1123_v43   ;;  %v799_v47 = vadd.f32 %v736_v45, %v735_v40 }
  0xb6   :  { %1287 = vst [vmem:[#allocation7 + $0x40] sm:$0xff] %v1163_v46  }
  0xb9   :  { %v1532_v2 = vpop.f32.mrf.mxu2  ;;  %v1562_v24 = vpop.f32.mrf.mxu3 }
  0xba   :  { %v382_v48 = vpop.f32.mrf.mxu0  ;;  %v1520_v49 = vpop.f32.mrf.mxu1  ;;  %v1203_v3 = vpack.c.bf16 %v1532_v2, %v1526_v60  ;;  %v1243_v26 = vpack.c.bf16 %v1562_v24, %v1556_v20 }
  0xbb   :  { %v666_v50 = vadd.f32 %v665_v44, %v382_v48  ;;  %v737_v51 = vmul.f32 %v382_v48, %v382_v48 }
  0xbc   :  { %1295 = vst [vmem:[#allocation7 + $0x80] sm:$0xff] %v1203_v3  }
  0xbd   :  { %v800_v52 = vadd.f32 %v799_v47, %v737_v51  ;;  %1303 = vst [vmem:[#allocation7 + $0xc0] sm:$0xff] %v1243_v26  }
  0xc1   :  { %v1542_v10 = vpop.f32.mrf.mxu2  ;;  %v1574_v32 = vpop.f32.mrf.mxu3 }
  0xc2   :  { %v384_v54 = vpop.f32.mrf.mxu0  ;;  %v1522_v55 = vpop.f32.mrf.mxu1 }
  0xc3   :  { %v1128_v56 = vpack.c.bf16 %v384_v54, %v382_v48  ;;  %v667_v57 = vadd.f32 %v666_v50, %v384_v54  ;;  %v738_v58 = vmul.f32 %v384_v54, %v384_v54  ;;  %v1168_v59 = vpack.c.bf16 %v1522_v55, %v1520_v49 }
  0xc5   :  { %1280 = vst [vmem:[#allocation7 + $0x8] sm:$0xff] %v1128_v56   ;;  %v801_v61 = vadd.f32 %v800_v52, %v738_v58 }
  0xc6   :  { %1288 = vst [vmem:[#allocation7 + $0x48] sm:$0xff] %v1168_v59  }
  0xc9   :  { %v1546_v13 = vpop.f32.mrf.mxu2  ;;  %v1580_v36 = vpop.f32.mrf.mxu3 }
  0xca   :  { %v387_v62 = vpop.f32.mrf.mxu0  ;;  %v1528_v63 = vpop.f32.mrf.mxu1  ;;  %v1208_v14 = vpack.c.bf16 %v1546_v13, %v1542_v10  ;;  %v1248_v39 = vpack.c.bf16 %v1580_v36, %v1574_v32 }
  0xcb   :  { %v1530_v0 = vadd.f32 %v667_v57, %v387_v62  ;;  %v739_v1 = vmul.f32 %v387_v62, %v387_v62 }
  0xcc   :  { %1296 = vst [vmem:[#allocation7 + $0x88] sm:$0xff] %v1208_v14  }
  0xcd   :  { %v1536_v4 = vadd.f32 %v801_v61, %v739_v1  ;;  %1304 = vst [vmem:[#allocation7 + $0xc8] sm:$0xff] %v1248_v39  }
  0xd1   :  { %v1554_v19 = vpop.f32.mrf.mxu2  ;;  %v1592_v46 = vpop.f32.mrf.mxu3 }
  0xd2   :  { %v389_v6 = vpop.f32.mrf.mxu0  ;;  %v1538_v7 = vpop.f32.mrf.mxu1 }
  0xd3   :  { %v1133_v8 = vpack.c.bf16 %v389_v6, %v387_v62  ;;  %v1173_v9 = vpack.c.bf16 %v1538_v7, %v1528_v63  ;;  %v740_v52 = vmul.f32 %v389_v6, %v389_v6  ;;  %v669_v57 = vadd.f32 %v1530_v0, %v389_v6 }
  0xd5   :  { %1281 = vst [vmem:[#allocation7 + $0x10] sm:$0xff] %v1133_v8   ;;  %v803_v58 = vadd.f32 %v1536_v4, %v740_v52 }
  0xd6   :  { %1289 = vst [vmem:[#allocation7 + $0x50] sm:$0xff] %v1173_v9  }
  0xd9   :  { %v1560_v23 = vpop.f32.mrf.mxu2  ;;  %v1598_v51 = vpop.f32.mrf.mxu3 }
  0xda   :  { %v392_v11 = vpop.f32.mrf.mxu0  ;;  %v1544_v12 = vpop.f32.mrf.mxu1  ;;  %v1213_v25 = vpack.c.bf16 %v1560_v23, %v1554_v19  ;;  %v1253_v54 = vpack.c.bf16 %v1598_v51, %v1592_v46 }
  0xdb   :  { %v741_v56 = vmul.f32 %v392_v11, %v392_v11  ;;  %v670_v61 = vadd.f32 %v669_v57, %v392_v11 }
  0xdc   :  { %1297 = vst [vmem:[#allocation7 + $0x90] sm:$0xff] %v1213_v25  }
  0xdd   :  { %1305 = vst [vmem:[#allocation7 + $0xd0] sm:$0xff] %v1253_v54   ;;  %v804_v62 = vadd.f32 %v803_v58, %v741_v56 }
  0xe1   :  { %v1572_v31 = vpop.f32.mrf.mxu2 }
  0xe2   :  { %v394_v15 = vpop.f32.mrf.mxu0  ;;  %v1550_v16 = vpop.f32.mrf.mxu1 }
  0xe3   :  { %v1138_v17 = vpack.c.bf16 %v394_v15, %v392_v11  ;;  %v1178_v18 = vpack.c.bf16 %v1550_v16, %v1544_v12  ;;  %v742_v59 = vmul.f32 %v394_v15, %v394_v15  ;;  %v671_v8 = vadd.f32 %v670_v61, %v394_v15 }
  0xe5   :  { %1282 = vst [vmem:[#allocation7 + $0x18] sm:$0xff] %v1138_v17   ;;  %v805_v0 = vadd.f32 %v804_v62, %v742_v59 }
  0xe6   :  { %1290 = vst [vmem:[#allocation7 + $0x58] sm:$0xff] %v1178_v18   ;;  %v1612_v18 = vpop.f32.mrf.mxu3 }
  0xe9   :  { %v1578_v35 = vpop.f32.mrf.mxu2 }
  0xea   :  { %v397_v21 = vpop.f32.mrf.mxu0  ;;  %v1558_v22 = vpop.f32.mrf.mxu1  ;;  %v1218_v38 = vpack.c.bf16 %v1578_v35, %v1572_v31 }
  0xeb   :  { %v743_v1 = vmul.f32 %v397_v21, %v397_v21  ;;  %v672_v25 = vadd.f32 %v671_v8, %v397_v21 }
  0xec   :  { %1298 = vst [vmem:[#allocation7 + $0x98] sm:$0xff] %v1218_v38  }
  0xed   :  { %v806_v4 = vadd.f32 %v805_v0, %v743_v1 }
  0xee   :  { %v1618_v54 = vpop.f32.mrf.mxu3 }
  0xf1   :  { %v1590_v45 = vpop.f32.mrf.mxu2 }
  0xf2   :  { %v399_v27 = vpop.f32.mrf.mxu0  ;;  %v1568_v28 = vpop.f32.mrf.mxu1 }
  0xf3   :  { %v1143_v29 = vpack.c.bf16 %v399_v27, %v397_v21  ;;  %v1183_v30 = vpack.c.bf16 %v1568_v28, %v1558_v22  ;;  %v744_v6 = vmul.f32 %v399_v27, %v399_v27  ;;  %v673_v26 = vadd.f32 %v672_v25, %v399_v27 }
  0xf4   :  { %v1258_v27 = vpack.c.bf16 %v1618_v54, %v1612_v18 }
  0xf5   :  { %1283 = vst [vmem:[#allocation7 + $0x20] sm:$0xff] %v1143_v29   ;;  %v807_v29 = vadd.f32 %v806_v4, %v744_v6 }
  0xf6   :  { %1291 = vst [vmem:[#allocation7 + $0x60] sm:$0xff] %v1183_v30  }
  0xf7   :  { %1306 = vst [vmem:[#allocation7 + $0xd8] sm:$0xff] %v1258_v27  }
  0xf9   :  { %v1596_v50 = vpop.f32.mrf.mxu2 }
  0xfa   :  { %v402_v33 = vpop.f32.mrf.mxu0  ;;  %v1576_v34 = vpop.f32.mrf.mxu1  ;;  %v1223_v53 = vpack.c.bf16 %v1596_v50, %v1590_v45 }
  0xfb   :  { %v745_v11 = vmul.f32 %v402_v33, %v402_v33  ;;  %v674_v38 = vadd.f32 %v673_v26, %v402_v33 }
  0xfc   :  { %1299 = vst [vmem:[#allocation7 + $0xa0] sm:$0xff] %v1223_v53  }
  0xfd   :  { %v808_v15 = vadd.f32 %v807_v29, %v745_v11  ;;  %v752_v29 = vmul.f32 %v1516_v42, %v1516_v42 }
 0x101   :  { %v1610_v17 = vpop.f32.mrf.mxu2 }
 0x102   :  { %v404_v40 = vpop.f32.mrf.mxu0  ;;  %v1586_v41 = vpop.f32.mrf.mxu1 }
 0x103   :  { %v1148_v43 = vpack.c.bf16 %v404_v40, %v402_v33  ;;  %v1188_v44 = vpack.c.bf16 %v1586_v41, %v1576_v34  ;;  %v746_v30 = vmul.f32 %v404_v40, %v404_v40  ;;  %v675_v52 = vadd.f32 %v674_v38, %v404_v40 }
 0x105   :  { %1284 = vst [vmem:[#allocation7 + $0x28] sm:$0xff] %v1148_v43   ;;  %v809_v56 = vadd.f32 %v808_v15, %v746_v30  ;;  %v753_v15 = vmul.f32 %v1520_v49, %v1520_v49 }
 0x106   :  { %1292 = vst [vmem:[#allocation7 + $0x68] sm:$0xff] %v1188_v44  }
 0x109   :  { %v1616_v53 = vpop.f32.mrf.mxu2 }
 0x10a   :  { %v407_v47 = vpop.f32.mrf.mxu0  ;;  %v1594_v48 = vpop.f32.mrf.mxu1  ;;  %v1228_v57 = vpack.c.bf16 %v1616_v53, %v1610_v17 }
 0x10b   :  { %v747_v39 = vmul.f32 %v407_v47, %v407_v47  ;;  %v676_v58 = vadd.f32 %v675_v52, %v407_v47  ;;  %v754_v52 = vmul.f32 %v1522_v55, %v1522_v55 }
 0x10c   :  { %1300 = vst [vmem:[#allocation7 + $0xa8] sm:$0xff] %v1228_v57  }
 0x10d   :  { %v810_v33 = vadd.f32 %v809_v56, %v747_v39 }
 0x111   :  { %v1628_v4 = vpop.f32.mrf.mxu2 }
 0x112   :  { %v409_v3 = vpop.f32.mrf.mxu0  ;;  %v1606_v5 = vpop.f32.mrf.mxu1 }
 0x113   :  { %v1153_v9 = vpack.c.bf16 %v409_v3, %v407_v47  ;;  %v1193_v14 = vpack.c.bf16 %v1606_v5, %v1594_v48  ;;  %v748_v21 = vmul.f32 %v409_v3, %v409_v3  ;;  %v677_v61 = vadd.f32 %v676_v58, %v409_v3  ;;  %v1630_v47 = vpop.f32.mrf.mxu3 }
 0x114   :  { %v751_v3 = vmul.f32 %v1514_v37, %v1514_v37 }
 0x115   :  { %1285 = vst [vmem:[#allocation7 + $0x30] sm:$0xff] %v1153_v9   ;;  %v811_v62 = vadd.f32 %v810_v33, %v748_v21 }
 0x116   :  { %1293 = vst [vmem:[#allocation7 + $0x70] sm:$0xff] %v1193_v14  }
 0x119   :  { %v1644_v21 = vpop.f32.mrf.mxu2 }
 0x11a   :  { %v412_v43 = vpop.f32.mrf.mxu0  ;;  %v1614_v44 = vpop.f32.mrf.mxu1 }
 0x11b   :  { %v749_v59 = vmul.f32 %v412_v43, %v412_v43  ;;  %v678_v40 = vadd.f32 %v677_v61, %v412_v43  ;;  %v1646_v57 = vpop.f32.mrf.mxu3 }
 0x11c   :  { %v1263_v27 = vpack.c.bf16 %v1646_v57, %v1630_v47 }
 0x11d   :  { %v812_v1 = vadd.f32 %v811_v62, %v749_v59  ;;  %v757_v62 = vmul.f32 %v1544_v12, %v1544_v12 }
 0x11e   :  { %1307 = vst [vmem:[#allocation7 + $0xe0] sm:$0xff] %v1263_v27   ;;  %v764_v27 = vmul.f32 %v1606_v5, %v1606_v5 }
 0x122   :  { %v414_v8 = vpop.f32.mrf.mxu0  ;;  %v1624_v9 = vpop.f32.mrf.mxu1 }
 0x123   :  { %v1158_v14 = vpack.c.bf16 %v414_v8, %v412_v43  ;;  %v679_v0 = vadd.f32 %v678_v40, %v414_v8  ;;  %v750_v6 = vmul.f32 %v414_v8, %v414_v8  ;;  %v1198_v25 = vpack.c.bf16 %v1624_v9, %v1614_v44 }
 0x124   :  { %v758_v8 = vmul.f32 %v1550_v16, %v1550_v16 }
 0x125   :  { %1286 = vst [vmem:[#allocation7 + $0x38] sm:$0xff] %v1158_v14   ;;  %v680_v11 = vadd.f32 %v679_v0, %v1514_v37  ;;  %v813_v26 = vadd.f32 %v812_v1, %v750_v6  ;;  %v1664_v0 = vpop.f32.mrf.mxu2  ;;  %v1666_v6 = vpop.f32.mrf.mxu3 }
 0x126   :  { %1294 = vst [vmem:[#allocation7 + $0x78] sm:$0xff] %v1198_v25  }
 0x127   :  { %v681_v30 = vadd.f32 %v680_v11, %v1516_v42  ;;  %v814_v38 = vadd.f32 %v813_v26, %v751_v3  ;;  %v1233_v42 = vpack.c.bf16 %v1644_v21, %v1628_v4  ;;  %v760_v11 = vmul.f32 %v1568_v28, %v1568_v28 }
 0x129   :  { %v682_v39 = vadd.f32 %v681_v30, %v1520_v49  ;;  %v815_v43 = vadd.f32 %v814_v38, %v752_v29  ;;  %v755_v49 = vmul.f32 %v1528_v63, %v1528_v63  ;;  %1301 = vst [vmem:[#allocation7 + $0xb0] sm:$0xff] %v1233_v42   ;;  %v762_v38 = vmul.f32 %v1586_v41, %v1586_v41 }
 0x12b   :  { %v683_v56 = vadd.f32 %v682_v39, %v1522_v55  ;;  %v816_v37 = vadd.f32 %v815_v43, %v753_v15  ;;  %v756_v55 = vmul.f32 %v1538_v7, %v1538_v7 }
 0x12d   :  { %v684_v58 = vadd.f32 %v683_v56, %v1528_v63  ;;  %v817_v33 = vadd.f32 %v816_v37, %v754_v52  ;;  %v1682_v43 = vpop.f32.mrf.mxu3 }
 0x12e   :  { %v1268_v52 = vpack.c.bf16 %v1682_v43, %v1666_v6 }
 0x12f   :  { %v685_v59 = vadd.f32 %v684_v58, %v1538_v7  ;;  %v818_v61 = vadd.f32 %v817_v33, %v755_v49  ;;  %v759_v7 = vmul.f32 %v1558_v22, %v1558_v22  ;;  %v765_v33 = vmul.f32 %v1614_v44, %v1614_v44 }
 0x130   :  { %1308 = vst [vmem:[#allocation7 + $0xe8] sm:$0xff] %v1268_v52   ;;  %v775_v52 = vmul.f32 %v1590_v45, %v1590_v45 }
 0x131   :  { %v819_v40 = vadd.f32 %v818_v61, %v756_v55  ;;  %v686_v1 = vadd.f32 %v685_v59, %v1544_v12 }
 0x133   :  { %v687_v63 = vadd.f32 %v686_v1, %v1550_v16  ;;  %v820_v14 = vadd.f32 %v819_v40, %v757_v62  ;;  %v761_v16 = vmul.f32 %v1576_v34, %v1576_v34  ;;  %v767_v62 = vmul.f32 %v1526_v60, %v1526_v60 }
 0x134   :  { %v768_v1 = vmul.f32 %v1532_v2, %v1532_v2 }
 0x135   :  { %v688_v25 = vadd.f32 %v687_v63, %v1558_v22  ;;  %v821_v3 = vadd.f32 %v820_v14, %v758_v8  ;;  %v1680_v22 = vpop.f32.mrf.mxu2  ;;  %v1700_v61 = vpop.f32.mrf.mxu3  ;;  %v769_v63 = vmul.f32 %v1542_v10, %v1542_v10 }
 0x137   :  { %v689_v12 = vadd.f32 %v688_v25, %v1568_v28  ;;  %v822_v26 = vadd.f32 %v821_v3, %v759_v7  ;;  %v1238_v28 = vpack.c.bf16 %v1680_v22, %v1664_v0  ;;  %v770_v7 = vmul.f32 %v1546_v13, %v1546_v13 }
 0x139   :  { %v690_v29 = vadd.f32 %v689_v12, %v1576_v34  ;;  %v823_v30 = vadd.f32 %v822_v26, %v760_v11  ;;  %v763_v34 = vmul.f32 %v1594_v48, %v1594_v48  ;;  %1302 = vst [vmem:[#allocation7 + $0xb8] sm:$0xff] %v1238_v28  }
 0x13b   :  { %v691_v15 = vadd.f32 %v690_v29, %v1586_v41  ;;  %v824_v39 = vadd.f32 %v823_v30, %v761_v16 }
 0x13d   :  { %v692_v56 = vadd.f32 %v691_v15, %v1594_v48  ;;  %v825_v37 = vadd.f32 %v824_v39, %v762_v38  ;;  %v766_v48 = vmul.f32 %v1624_v9, %v1624_v9  ;;  %v774_v15 = vmul.f32 %v1578_v35, %v1578_v35 }
 0x13f   :  { %v826_v42 = vadd.f32 %v825_v37, %v763_v34  ;;  %v693_v41 = vadd.f32 %v692_v56, %v1606_v5  ;;  %v776_v34 = vmul.f32 %v1596_v50, %v1596_v50 }
 0x141   :  { %v827_v49 = vadd.f32 %v826_v42, %v764_v27  ;;  %v694_v58 = vadd.f32 %v693_v41, %v1614_v44  ;;  %v777_v42 = vmul.f32 %v1610_v17, %v1610_v17  ;;  %v778_v27 = vmul.f32 %v1616_v53, %v1616_v53 }
 0x143   :  { %v828_v55 = vadd.f32 %v827_v49, %v765_v33  ;;  %v695_v59 = vadd.f32 %v694_v58, %v1624_v9 }
 0x145   :  { %v696_v5 = vadd.f32 %v695_v59, %v1526_v60  ;;  %v829_v40 = vadd.f32 %v828_v55, %v766_v48  ;;  %v1714_v60 = vpop.f32.mrf.mxu3  ;;  %v779_v55 = vmul.f32 %v1628_v4, %v1628_v4 }
 0x146   :  { %v1273_v11 = vpack.c.bf16 %v1714_v60, %v1700_v61 }
 0x147   :  { %v697_v8 = vadd.f32 %v696_v5, %v1532_v2  ;;  %v830_v44 = vadd.f32 %v829_v40, %v767_v62  ;;  %v771_v2 = vmul.f32 %v1554_v19, %v1554_v19  ;;  %v781_v40 = vmul.f32 %v1664_v0, %v1664_v0 }
 0x148   :  { %1309 = vst [vmem:[#allocation7 + $0xf0] sm:$0xff] %v1273_v11  }
 0x149   :  { %v698_v14 = vadd.f32 %v697_v8, %v1542_v10  ;;  %v831_v9 = vadd.f32 %v830_v44, %v768_v1  ;;  %v772_v10 = vmul.f32 %v1560_v23, %v1560_v23  ;;  %v782_v8 = vmul.f32 %v1680_v22, %v1680_v22 }
 0x14a   :  { %v783_v44 = vmul.f32 %v1556_v20, %v1556_v20 }
 0x14b   :  { %v699_v25 = vadd.f32 %v698_v14, %v1546_v13  ;;  %v832_v3 = vadd.f32 %v831_v9, %v769_v63  ;;  %v773_v13 = vmul.f32 %v1572_v31, %v1572_v31  ;;  %v784_v14 = vmul.f32 %v1562_v24, %v1562_v24 }
 0x14d   :  { %v700_v12 = vadd.f32 %v699_v25, %v1554_v19  ;;  %v833_v26 = vadd.f32 %v832_v3, %v770_v7  ;;  %v1730_v28 = vpop.f32.mrf.mxu3 }
 0x14f   :  { %v701_v16 = vadd.f32 %v700_v12, %v1560_v23  ;;  %v834_v29 = vadd.f32 %v833_v26, %v771_v2 }
 0x151   :  { %v835_v30 = vadd.f32 %v834_v29, %v772_v10  ;;  %v702_v38 = vadd.f32 %v701_v16, %v1572_v31 }
 0x153   :  { %v703_v39 = vadd.f32 %v702_v38, %v1578_v35  ;;  %v836_v19 = vadd.f32 %v835_v30, %v773_v13 }
 0x155   :  { %v704_v23 = vadd.f32 %v703_v39, %v1590_v45  ;;  %v837_v56 = vadd.f32 %v836_v19, %v774_v15 }
 0x157   :  { %v705_v37 = vadd.f32 %v704_v23, %v1596_v50  ;;  %v838_v31 = vadd.f32 %v837_v56, %v775_v52  ;;  %v1747_v50 = vpop.f32.mrf.mxu3 }
 0x158   :  { %v1278_v58 = vpack.c.bf16 %v1747_v50, %v1730_v28 }
 0x159   :  { %v706_v35 = vadd.f32 %v705_v37, %v1610_v17  ;;  %v839_v41 = vadd.f32 %v838_v31, %v776_v34  ;;  %v794_v34 = vmul.f32 %v1682_v43, %v1682_v43 }
 0x15a   :  { %1310 = vst [vmem:[#allocation7 + $0xf8] sm:$0xff] %v1278_v58   ;;  %v798_v58 = vmul.f32 %v1747_v50, %v1747_v50 }
 0x15b   :  { %v707_v45 = vadd.f32 %v706_v35, %v1616_v53  ;;  %v840_v49 = vadd.f32 %v839_v41, %v777_v42  ;;  %v780_v53 = vmul.f32 %v1644_v21, %v1644_v21  ;;  %881 = dma.vmem_to_hbm [thread:$0]  %s874_s1, 4096, %s876_s29, [#allocation4], %s1471_s23, %s1471_s23, %s1472_s24   ;;  %v795_v42 = vmul.f32 %v1700_v61, %v1700_v61 }
 0x15c   :  { %v796_v41 = vmul.f32 %v1714_v60, %v1714_v60 }
 0x15d   :  { %v841_v17 = vadd.f32 %v840_v49, %v778_v27  ;;  %v708_v33 = vadd.f32 %v707_v45, %v1628_v4  ;;  %v797_v27 = vmul.f32 %v1730_v28, %v1730_v28 }
 0x15f   :  { %v842_v59 = vadd.f32 %v841_v17, %v779_v55  ;;  %v709_v48 = vadd.f32 %v708_v33, %v1644_v21 }
 0x161   :  { %v843_v62 = vadd.f32 %v842_v59, %v780_v53  ;;  %v710_v5 = vadd.f32 %v709_v48, %v1664_v0  ;;  %v785_v0 = vmul.f32 %v1574_v32, %v1574_v32 }
 0x163   :  { %v844_v1 = vadd.f32 %v843_v62, %v781_v40  ;;  %v711_v4 = vadd.f32 %v710_v5, %v1680_v22  ;;  %v786_v22 = vmul.f32 %v1580_v36, %v1580_v36 }
 0x165   :  { %v712_v21 = vadd.f32 %v711_v4, %v1556_v20  ;;  %v845_v63 = vadd.f32 %v844_v1, %v782_v8  ;;  %v787_v20 = vmul.f32 %v1592_v46, %v1592_v46 }
 0x167   :  { %v713_v9 = vadd.f32 %v712_v21, %v1562_v24  ;;  %v846_v7 = vadd.f32 %v845_v63, %v783_v44  ;;  %v788_v24 = vmul.f32 %v1598_v51, %v1598_v51 }
 0x169   :  { %v714_v25 = vadd.f32 %v713_v9, %v1574_v32  ;;  %v847_v3 = vadd.f32 %v846_v7, %v784_v14  ;;  %v789_v32 = vmul.f32 %v1612_v18, %v1612_v18 }
 0x16b   :  { %v715_v11 = vadd.f32 %v714_v25, %v1580_v36  ;;  %v848_v2 = vadd.f32 %v847_v3, %v785_v0  ;;  %v790_v36 = vmul.f32 %v1618_v54, %v1618_v54 }
 0x16d   :  { %v716_v12 = vadd.f32 %v715_v11, %v1592_v46  ;;  %v849_v26 = vadd.f32 %v848_v2, %v786_v22  ;;  %v791_v46 = vmul.f32 %v1630_v47, %v1630_v47 }
 0x16f   :  { %v717_v10 = vadd.f32 %v716_v12, %v1598_v51  ;;  %v850_v16 = vadd.f32 %v849_v26, %v787_v20  ;;  %v792_v51 = vmul.f32 %v1646_v57, %v1646_v57 }
 0x171   :  { %v851_v29 = vadd.f32 %v850_v16, %v788_v24  ;;  %v718_v13 = vadd.f32 %v717_v10, %v1612_v18  ;;  %v793_v18 = vmul.f32 %v1666_v6, %v1666_v6 }
 0x173   :  { %v719_v30 = vadd.f32 %v718_v13, %v1618_v54  ;;  %v852_v38 = vadd.f32 %v851_v29, %v789_v32 }
 0x175   :  { %v720_v15 = vadd.f32 %v719_v30, %v1630_v47  ;;  %v853_v39 = vadd.f32 %v852_v38, %v790_v36 }
 0x177   :  { %v721_v19 = vadd.f32 %v720_v15, %v1646_v57  ;;  %v854_v52 = vadd.f32 %v853_v39, %v791_v46 }
 0x179   :  { %v722_v23 = vadd.f32 %v721_v19, %v1666_v6  ;;  %v855_v56 = vadd.f32 %v854_v52, %v792_v51 }
 0x17b   :  { %v723_v54 = vadd.f32 %v722_v23, %v1682_v43  ;;  %v856_v37 = vadd.f32 %v855_v56, %v793_v18 }
 0x17d   :  { %v857_v47 = vadd.f32 %v856_v37, %v794_v34  ;;  %v724_v31 = vadd.f32 %v723_v54, %v1700_v61 }
 0x17f   :  { %v858_v57 = vadd.f32 %v857_v47, %v795_v42  ;;  %v725_v35 = vadd.f32 %v724_v31, %v1714_v60 }
 0x181   :  { %v859_v6 = vadd.f32 %v858_v57, %v796_v41  ;;  %v726_v45 = vadd.f32 %v725_v35, %v1730_v28 }
 0x183   :  { %v860_v43 = vadd.f32 %v859_v6, %v797_v27  ;;  %v727_v49 = vadd.f32 %v726_v45, %v1747_v50 }
 0x185   :  { %v728_v17 = vrot.slane %v727_v49, 4  ;;  %v861_v61 = vadd.f32 %v860_v43, %v798_v58 }
 0x187   :  { %v729_v33 = vadd.f32 %v728_v17, %v727_v49  ;;  %v862_v55 = vrot.slane %v861_v61, 4 }
 0x189   :  { %v730_v59 = vrot.slane %v729_v33, 2  ;;  %v863_v48 = vadd.f32 %v862_v55, %v861_v61 }
 0x18b   :  { %v731_v53 = vadd.f32 %v730_v59, %v729_v33  ;;  %v864_v60 = vrot.slane %v863_v48, 2 }
 0x18d   :  { %v865_v28 = vadd.f32 %v864_v60, %v863_v48  ;;  %v732_v62 = vrot.slane %v731_v53, 1 }
 0x18f   :  { %v733_v50 = vadd.f32 %v732_v62, %v731_v53  ;;  %v866_v5 = vrot.slane %v865_v28, 1 }
 0x191   :  { %734 = vst [vmem:[#allocation8] sm:$0x1] %v733_v50  ;;  %v867_v40 = vadd.f32 %v866_v5, %v865_v28 }
 0x192   :  { %892 = dma.vmem_to_hbm [thread:$0]  %s888_s30, 16, %s890_s7, [#allocation9]  }
 0x193   :  { %868 = vst [vmem:[#allocation10] sm:$0x1] %v867_v40 }
 0x194   :  { %903 = dma.vmem_to_hbm [thread:$0]  %s899_s9, 16, %s901_s12, [#allocation9]  }
 0x195   :  { %1466 = dma.done.wait [#allocation4], 4096  }
 0x196   :  { %1467 = vsyncadd [#allocation4], 4294963200 }
 0x197   :  { %1468 = dma.done.wait [#allocation9], 32  }
 0x198   :  { %1469 = vsyncadd [#allocation9], 4294967264 }
 0x199   :  { %916 = vsyncpa [#allocation3], 1 }
 0x19a   :  { %917 = vsyncpa [#allocation6], 1 }
 0x19b   :  { %918 = vsyncpa [#allocation4], 1 }
 0x19c   :  { %919 = vsyncpa [#allocation9], 1 }

</bundles_post_ra>
